<compile_context>
chip_gen: v7x
topology: tpu7x:2x2x1
jax: 0.10.0
libtpu: 0.0.40
codegen_flags: <defaults>
</compile_context>

<pallas_src>
from functools import partial

import jax
import jax.numpy as jnp
from jax.experimental import pallas as pl
from jax.experimental.pallas import tpu as pltpu


def _round_up(x, m):
    return ((x + m - 1) // m) * m


def _linear_bias_kernel(x_ref, w_ref, b_ref, o_ref):
    # x_ref: (tm, K)  w_ref: (out_pad, K)  b_ref: (1, out_pad)  o_ref: (tm, out_pad)
    acc = jax.lax.dot_general(
        x_ref[...], w_ref[...],
        dimension_numbers=(((1,), (1,)), ((), ())),   # x @ w.T on the MXU
        preferred_element_type=jnp.float32)
    o_ref[...] = (acc + b_ref[...].astype(jnp.float32)).astype(o_ref.dtype)


@partial(jax.jit, static_argnames=("patch_size", "in_channels", "tm"))
def to_pixel_linear(x, weight, bias, *, patch_size, in_channels, tm=512):
    """x: (N, L, in_dim); weight: (out_dim, in_dim) [PyTorch Linear layout];
    bias: (out_dim,). Returns imgs: (N, C, H, W)."""
    N, L, in_dim = x.shape
    out_dim = weight.shape[0]
    assert out_dim == in_channels * patch_size * patch_size

    tokens = N * L

    # ---- tile selection --------------------------------------------------
    # Large row tiles amortize the per-grid-step overhead (op is HBM-bound);
    # keep tm a multiple of 8 (f32 sublanes) and keep >= 2 grid steps when
    # possible so v7x's two TensorCores can both be used.
    tm_eff = min(tm, _round_up(tokens, 8))
    tm_eff = max(8, (tm_eff // 8) * 8)
    grid = pl.cdiv(tokens, tm_eff)
    if grid == 1 and tokens > 8:
        tm_eff = _round_up(pl.cdiv(tokens, 2), 8)
        grid = pl.cdiv(tokens, tm_eff)
    tokens_pad = grid * tm_eff

    # Lane-dense output: pad the output feature dim to a multiple of 128.
    out_pad = _round_up(out_dim, 128)

    # ---- operand prep (all fused by XLA inside this jit) ------------------
    x_flat = x.reshape(tokens, in_dim)
    if tokens_pad != tokens:
        x_flat = jnp.pad(x_flat, ((0, tokens_pad - tokens), (0, 0)))
    if out_pad != out_dim:
        w_k = jnp.pad(weight, ((0, out_pad - out_dim), (0, 0)))
        b_k = jnp.pad(bias, (0, out_pad - out_dim))
    else:
        w_k, b_k = weight, bias
    b_k = b_k.reshape(1, out_pad)

    # ---- VMEM budget: double-buffered x/out tiles + resident weight/bias --
    itemsize = jnp.dtype(x.dtype).itemsize
    blk_bytes = (tm_eff * in_dim + tm_eff * out_pad) * itemsize
    res_bytes = (out_pad * in_dim + out_pad) * jnp.dtype(weight.dtype).itemsize
    vmem_needed = 2 * blk_bytes + res_bytes
    vmem_limit = int(min(max(2 * vmem_needed, 32 * 1024 * 1024),
                         60 * 1024 * 1024))   # headroom under v7x's 64 MiB

    out_flat = pl.pallas_call(
        _linear_bias_kernel,
        out_shape=jax.ShapeDtypeStruct((tokens_pad, out_pad), x.dtype),
        grid_spec=pltpu.PrefetchScalarGridSpec(
            num_scalar_prefetch=0,
            grid=(grid,),
            in_specs=[
                pl.BlockSpec((tm_eff, in_dim), lambda i: (i, 0)),    # x row tile
                pl.BlockSpec((out_pad, in_dim), lambda i: (0, 0)),   # resident weight
                pl.BlockSpec((1, out_pad), lambda i: (0, 0)),        # resident bias
            ],
            out_specs=pl.BlockSpec((tm_eff, out_pad), lambda i: (i, 0)),
        ),
        compiler_params=pltpu.CompilerParams(
            dimension_semantics=("parallel",),
            vmem_limit_bytes=vmem_limit),
    )(x_flat, w_k, b_k)

    # ---- unpatchify (layout glue; stays in the same jit so XLA fuses it) --
    out_flat = out_flat[:tokens, :out_dim]
    p = patch_size
    h = w = int(round(L ** 0.5))
    assert h * w == L
    y = out_flat.reshape(N, h, w, p, p, in_channels)
    y = jnp.transpose(y, (0, 5, 1, 3, 2, 4))   # 'nhwpqc -> nchpwq'
    return y.reshape(N, in_channels, h * p, w * p)
    # TODO(synk): for channel-last consumers, emit NHWC directly (reshape only,
    # no transpose) to halve the output HBM traffic of this mem-bound op.


def _reference(x, weight, bias, *, patch_size, in_channels):
    N, L, in_dim = x.shape
    out = jnp.einsum('nld,od->nlo', x, weight) + bias
    p = patch_size
    h = w = int(round(L ** 0.5))
    y = out.reshape(N, h, w, p, p, in_channels)
    y = jnp.transpose(y, (0, 5, 1, 3, 2, 4))
    return y.reshape(N, in_channels, h * p, w * p)


if __name__ == "__main__":
    # Small shapes consistent with ToPixel('linear'):
    #   img_size=32, patch_size=8 -> L = 16 patches; in_channels=3; in_dim=32
    N, img_size, patch_size, in_channels, in_dim = 2, 32, 8, 3, 32
    L = (img_size // patch_size) ** 2
    out_dim = in_channels * patch_size * patch_size   # 192

    key = jax.random.PRNGKey(0)
    kx, kw, kb = jax.random.split(key, 3)

    x = jax.random.normal(kx, (N, L, in_dim), dtype=jnp.float32)

    # nn.Linear default init: U(-1/sqrt(in_dim), 1/sqrt(in_dim))
    bound = 1.0 / (in_dim ** 0.5)
    weight = jax.random.uniform(kw, (out_dim, in_dim), jnp.float32, -bound, bound)
    bias = jax.random.uniform(kb, (out_dim,), jnp.float32, -bound, bound)

    imgs = to_pixel_linear(x, weight, bias,
                           patch_size=patch_size, in_channels=in_channels)
    imgs = jax.block_until_ready(imgs)

    ref = _reference(x, weight, bias,
                     patch_size=patch_size, in_channels=in_channels)
    assert imgs.shape == (N, in_channels, img_size, img_size), imgs.shape
    assert jnp.allclose(imgs, ref, atol=1e-5, rtol=1e-5)

    print("KERNEL_OK")
</pallas_src>

<mosaic_0001>
module attributes {stable_mosaic.version = 11 : i64} {
  func.func @_linear_bias_kernel(%arg0: i32, %arg1: memref<16x32xf32, #tpu.memory_space<vmem>>, %arg2: memref<256x32xf32, #tpu.memory_space<vmem>>, %arg3: memref<1x256xf32, #tpu.memory_space<vmem>>, %arg4: memref<16x256xf32, #tpu.memory_space<vmem>>) attributes {dimension_semantics = [#tpu.dimension_semantics<parallel>], iteration_bounds = array<i64: 2>, scalar_prefetch = 0 : i64, scratch_operands = 0 : i64, tpu.core_type = #tpu.core_type<tc>, window_params = [{transform_indices = @transform_0, window_bounds = array<i64: 16, 32>}, {pipeline_mode = #tpu.pipeline_mode<synchronous>, transform_indices = @transform_1, window_bounds = array<i64: 256, 32>}, {pipeline_mode = #tpu.pipeline_mode<synchronous>, transform_indices = @transform_2, window_bounds = array<i64: 1, 256>}, {transform_indices = @transform_3, window_bounds = array<i64: 16, 256>}]} {
    %c0 = arith.constant 0 : index
    %c0_0 = arith.constant 0 : index
    %0 = vector.load %arg1[%c0, %c0_0] : memref<16x32xf32, #tpu.memory_space<vmem>>, vector<16x32xf32>
    %c0_1 = arith.constant 0 : index
    %c0_2 = arith.constant 0 : index
    %1 = vector.load %arg2[%c0_1, %c0_2] : memref<256x32xf32, #tpu.memory_space<vmem>>, vector<256x32xf32>
    %cst = arith.constant dense<0.000000e+00> : vector<16x256xf32>
    %2 = tpu.matmul %0, %1, %cst {dimension_numbers = #tpu.dot_dimension_numbers<[1], [1], [0], [0], [0, 0, 1, 0], [], []>} : vector<16x32xf32>, vector<256x32xf32>, vector<16x256xf32> -> vector<16x256xf32>
    %c0_3 = arith.constant 0 : index
    %c0_4 = arith.constant 0 : index
    %3 = vector.load %arg3[%c0_3, %c0_4] : memref<1x256xf32, #tpu.memory_space<vmem>>, vector<1x256xf32>
    %4 = vector.broadcast %3 : vector<1x256xf32> to vector<16x256xf32>
    %5 = arith.addf %2, %4 : vector<16x256xf32>
    %c0_5 = arith.constant 0 : index
    %c0_6 = arith.constant 0 : index
    %6 = vector.load %arg4[%c0_5, %c0_6] : memref<16x256xf32, #tpu.memory_space<vmem>>, vector<16x256xf32>
    tpu.vector_store %arg4[%c0_5, %c0_6], %5 {strides = array<i32>} : memref<16x256xf32, #tpu.memory_space<vmem>>, vector<16x256xf32>,
    return
  }
  func.func @transform_0(%arg0: i32) -> (i32, i32) {
    %c0_i32 = arith.constant 0 : i32
    %c0_i32_0 = arith.constant 0 : i32
    return %arg0, %c0_i32 : i32, i32
  }
  func.func @transform_1(%arg0: i32) -> (i32, i32) {
    %c0_i32 = arith.constant 0 : i32
    %c0_i32_0 = arith.constant 0 : i32
    %c0_i32_1 = arith.constant 0 : i32
    return %c0_i32, %c0_i32_0 : i32, i32
  }
  func.func @transform_2(%arg0: i32) -> (i32, i32) {
    %c0_i32 = arith.constant 0 : i32
    %c0_i32_0 = arith.constant 0 : i32
    %c0_i32_1 = arith.constant 0 : i32
    return %c0_i32, %c0_i32_0 : i32, i32
  }
  func.func @transform_3(%arg0: i32) -> (i32, i32) {
    %c0_i32 = arith.constant 0 : i32
    %c0_i32_0 = arith.constant 0 : i32
    return %arg0, %c0_i32 : i32, i32
  }
}

</mosaic_0001>

<bundles_post_ra>
// kernel: to_pixel_linear.1
= control target key start
LH: loop header
LB: loop body
LE: loop exit
PB: predicated region body
PF: predicated region fallthrough
CT: control target
= control target key end

     0   :  { %s647_s12 = smov 0   ;;  %s849_s0 = inlined_call_operand.vmem [shape: f32[32,32], index: 0, kind: input, shape index: {}]   ;;  %s850_s1 = inlined_call_operand.vmem [shape: f32[256,32], index: 1, kind: input, shape index: {}]   ;;  %s851_s2 = inlined_call_operand.vmem [shape: f32[1,256], index: 2, kind: input, shape index: {}]   ;;  %s852_s3 = inlined_call_operand.vmem [shape: f32[32,256], index: 3, kind: output, shape index: {}]  }
   0x1 LB: > { %s464_s13 = sadd.s32 4294967295, %s625_s12   ;;  %p468_p0 = scmp.ge.s32.totalorder %s625_s12, 1  ;;  %s625_s12 = sphi %s647_s12, %s13_s12  }
   0x2   : > { %p138_p1 = scmp.lt.s32.totalorder %s625_s12, 3 }
   0x4   : > { %p139_p2 = pnand %p468_p0, %p138_p1 }
   0x5   : > { %v194_v0 = vld [vmem:[%s850_s1 + $0x80] sm:$0xff] (!%p139_p2)  ;;  %v195_v1 = vld [vmem:[%s850_s1 + $0x88] sm:$0xff] (!%p139_p2)  ;;  %vm222_vm0 = vcmask (!%p139_p2), 261120   ;;  %s469_s20 = sshll.u32 (!%p139_p2), %s464_s13, 1  ;;  %v196_v6 = vld [vmem:[%s850_s1 + $0x90] sm:$0xff] (!%p139_p2)  ;;  %v212_v51 = vlaneseq (!%p139_p2) }
   0x6   : > { %142 = sbr.rel (%p139_p2) target bundleno = 288 (0x120), region = 32  ;;  %v178_v2 = vld [vmem:[%s850_s1] sm:$0xff] (!%p139_p2)  ;;  %v547_v3 = vpack.c.bf16 (!%p139_p2), %v195_v1, %v194_v0  ;;  %vm666_vm1 = vmpackc.low (!%p139_p2), %vm222_vm0, %vm222_vm0  ;;  %v179_v5 = vld [vmem:[%s850_s1 + $0x8] sm:$0xff] (!%p139_p2)  ;;  %p164_p3 = scmp.lt.s32.totalorder (!%p139_p2), %s469_s20, 3 }
   0x7   : > { %v550_v7 = vpack.c.bf16 (!%p139_p2), %v179_v5, %v178_v2  ;;  %v197_v8 = vld [vmem:[%s850_s1 + $0x98] sm:$0xff] (!%p139_p2)  ;;  %v180_v10 = vld [vmem:[%s850_s1 + $0x10] sm:$0xff] (!%p139_p2)  ;;  %v198_v12 = vld [vmem:[%s850_s1 + $0xa0] sm:$0xff] (!%p139_p2)  ;;  %v213_v52 = vshrl.u32 (!%p139_p2), %v212_v51, 7 }
   0x8   : > { %549 = vmatprep.subr.msk.bf16.mxu0 (!%p139_p2), %vm666_vm1, %v547_v3  ;;  %595 = vmatprep.subr.msk.bf16.mxu1 (!%p139_p2), %vm666_vm1, %v547_v3  ;;  %v553_v9 = vpack.c.bf16 (!%p139_p2), %v197_v8, %v196_v6  ;;  %v181_v11 = vld [vmem:[%s850_s1 + $0x18] sm:$0xff] (!%p139_p2)  ;;  %v199_v13 = vld [vmem:[%s850_s1 + $0xa8] sm:$0xff] (!%p139_p2)  ;;  %v182_v18 = vld [vmem:[%s850_s1 + $0x20] sm:$0xff] (!%p139_p2) }
   0x9   : > { %552 = vmatpush3.bf16.xpose.msk.msra.mxu0 (!%p139_p2), %vm666_vm1, %v550_v7  ;;  %603 = vmatpush3.bf16.xpose.msk.msra.mxu1 (!%p139_p2), %vm666_vm1, %v550_v7  ;;  %v556_v14 = vpack.c.bf16 (!%p139_p2), %v181_v11, %v180_v10  ;;  %v559_v15 = vpack.c.bf16 (!%p139_p2), %v199_v13, %v198_v12  ;;  %v183_v19 = vld [vmem:[%s850_s1 + $0x28] sm:$0xff] (!%p139_p2)  ;;  %v200_v20 = vld [vmem:[%s850_s1 + $0xb0] sm:$0xff] (!%p139_p2)  ;;  %v201_v21 = vld [vmem:[%s850_s1 + $0xb8] sm:$0xff] (!%p139_p2)  ;;  %v214_v53 = vsub.s32 (!%p139_p2), 0, %v213_v52  ;;  %v218_v55 = vsub.s32 (!%p139_p2), 1, %v213_v52 }
   0xa   : > { %555 = vmatprep.subr.msk.bf16.mxu0 (!%p139_p2), %vm666_vm1, %v553_v9  ;;  %596 = vmatprep.subr.msk.bf16.mxu1 (!%p139_p2), %vm666_vm1, %v553_v9  ;;  %v562_v22 = vpack.c.bf16 (!%p139_p2), %v183_v19, %v182_v18  ;;  %v565_v23 = vpack.c.bf16 (!%p139_p2), %v201_v21, %v200_v20  ;;  %v184_v24 = vld [vmem:[%s850_s1 + $0x30] sm:$0xff] (!%p139_p2)  ;;  %v185_v25 = vld [vmem:[%s850_s1 + $0x38] sm:$0xff] (!%p139_p2)  ;;  %v202_v26 = vld [vmem:[%s850_s1 + $0xc0] sm:$0xff] (!%p139_p2) }
   0xb   : > { %v203_v27 = vld [vmem:[%s850_s1 + $0xc8] sm:$0xff] (!%p139_p2)  ;;  %v568_v28 = vpack.c.bf16 (!%p139_p2), %v185_v25, %v184_v24  ;;  %v186_v30 = vld [vmem:[%s850_s1 + $0x40] sm:$0xff] (!%p139_p2)  ;;  %v204_v32 = vld [vmem:[%s850_s1 + $0xd0] sm:$0xff] (!%p139_p2) }
   0xc   : > { %v571_v29 = vpack.c.bf16 (!%p139_p2), %v203_v27, %v202_v26  ;;  %v187_v31 = vld [vmem:[%s850_s1 + $0x48] sm:$0xff] (!%p139_p2)  ;;  %v205_v33 = vld [vmem:[%s850_s1 + $0xd8] sm:$0xff] (!%p139_p2)  ;;  %v188_v36 = vld [vmem:[%s850_s1 + $0x50] sm:$0xff] (!%p139_p2) }
   0xd   : > { %s856_s20 = smov (!%p164_p3, %s469_s20), 3  ;;  %v574_v34 = vpack.c.bf16 %v187_v31, %v186_v30  ;;  %v577_v35 = vpack.c.bf16 %v205_v33, %v204_v32  ;;  %v189_v37 = vld [vmem:[%s850_s1 + $0x58] sm:$0xff]  ;;  %v206_v38 = vld [vmem:[%s850_s1 + $0xe0] sm:$0xff]  ;;  %v207_v39 = vld [vmem:[%s850_s1 + $0xe8] sm:$0xff] }
   0xe   : > { %s470_s4 = sshll.u32 %s856_s20, 3  ;;  %v580_v40 = vpack.c.bf16 %v189_v37, %v188_v36  ;;  %v583_v41 = vpack.c.bf16 %v207_v39, %v206_v38  ;;  %v190_v42 = vld [vmem:[%s850_s1 + $0x60] sm:$0xff]  ;;  %v191_v43 = vld [vmem:[%s850_s1 + $0x68] sm:$0xff]  ;;  %v208_v44 = vld [vmem:[%s850_s1 + $0xf0] sm:$0xff]  ;;  %s510_s8 = sshll.u32 %s856_s20, 4 }
   0xf   : > { %s167_s11 = scalar_lea.vmem %s849_s0, %s470_s4  ;;  %v209_v45 = vld [vmem:[%s850_s1 + $0xf8] sm:$0xff]  ;;  %v586_v46 = vpack.c.bf16 %v191_v43, %v190_v42  ;;  %v192_v48 = vld [vmem:[%s850_s1 + $0x70] sm:$0xff]  ;;  %v210_v54 = vld [vmem:[%s851_s2] sm:$0x3] }
  0x10   : > { %v709_v16 = vld [vmem:[%s167_s11] sm:$0xff]  ;;  %v711_v17 = vld [vmem:[%s167_s11 + $0x8] sm:$0xff]  ;;  %v589_v47 = vpack.c.bf16 %v209_v45, %v208_v44  ;;  %v193_v49 = vld [vmem:[%s850_s1 + $0x78] sm:$0xff]  ;;  %v215_v56 = vrot.slane %v210_v54, %v214_v53  ;;  %v219_v57 = vrot.slane %v210_v54, %v218_v55  ;;  %s174_s11 = scalar_lea.vmem %s852_s3, %s510_s8 }
  0x11   : > { %558 = vmatpush3.bf16.xpose.msk.msra.mxu0 %vm666_vm1, %v556_v14  ;;  %604 = vmatpush3.bf16.xpose.msk.msra.mxu1 %vm666_vm1, %v556_v14  ;;  %v592_v50 = vpack.c.bf16 %v193_v49, %v192_v48 }
  0x12   : > { %561 = vmatprep.subr.msk.bf16.mxu0 %vm666_vm1, %v559_v15  ;;  %597 = vmatprep.subr.msk.bf16.mxu1 %vm666_vm1, %v559_v15 }
  0x13   : > { %543 = vmatprep.mubr.msk.f32.mxu0 %vm222_vm0, %v709_v16  ;;  %545 = vmatprep.mubr.msk.f32.mxu1 %vm222_vm0, %v711_v17 }
  0x19   : > { %564 = vmatpush3.bf16.xpose.msk.msra.mxu0 %vm666_vm1, %v562_v22  ;;  %605 = vmatpush3.bf16.xpose.msk.msra.mxu1 %vm666_vm1, %v562_v22 }
  0x1a   : > { %567 = vmatprep.subr.msk.bf16.mxu0 %vm666_vm1, %v565_v23  ;;  %598 = vmatprep.subr.msk.bf16.mxu1 %vm666_vm1, %v565_v23 }
  0x21   : > { %570 = vmatpush3.bf16.xpose.msk.msra.mxu0 %vm666_vm1, %v568_v28  ;;  %606 = vmatpush3.bf16.xpose.msk.msra.mxu1 %vm666_vm1, %v568_v28 }
  0x22   : > { %573 = vmatprep.subr.msk.bf16.mxu0 %vm666_vm1, %v571_v29  ;;  %599 = vmatprep.subr.msk.bf16.mxu1 %vm666_vm1, %v571_v29 }
  0x29   : > { %576 = vmatpush3.bf16.xpose.msk.msra.mxu0 %vm666_vm1, %v574_v34  ;;  %607 = vmatpush3.bf16.xpose.msk.msra.mxu1 %vm666_vm1, %v574_v34 }
  0x2a   : > { %579 = vmatprep.subr.msk.bf16.mxu0 %vm666_vm1, %v577_v35  ;;  %600 = vmatprep.subr.msk.bf16.mxu1 %vm666_vm1, %v577_v35 }
  0x31   : > { %582 = vmatpush3.bf16.xpose.msk.msra.mxu0 %vm666_vm1, %v580_v40  ;;  %608 = vmatpush3.bf16.xpose.msk.msra.mxu1 %vm666_vm1, %v580_v40 }
  0x32   : > { %585 = vmatprep.subr.msk.bf16.mxu0 %vm666_vm1, %v583_v41  ;;  %601 = vmatprep.subr.msk.bf16.mxu1 %vm666_vm1, %v583_v41 }
  0x39   : > { %588 = vmatpush3.bf16.xpose.msk.msra.mxu0 %vm666_vm1, %v586_v46  ;;  %609 = vmatpush3.bf16.xpose.msk.msra.mxu1 %vm666_vm1, %v586_v46 }
  0x3a   : > { %591 = vmatprep.subr.msk.bf16.mxu0 %vm666_vm1, %v589_v47  ;;  %602 = vmatprep.subr.msk.bf16.mxu1 %vm666_vm1, %v589_v47 }
  0x41   : > { %594 = vmatpush3.bf16.xpose.msk.msra.mxu0 %vm666_vm1, %v592_v50  ;;  %610 = vmatpush3.bf16.xpose.msk.msra.mxu1 %vm666_vm1, %v592_v50 }
  0x48   : > { %544 = vmatmul.mubr.msk.f32.vlgmr.msra.gmra.mrb[0].mxu0 %vm222_vm0, %v709_v16  ;;  %546 = vmatmul.mubr.msk.f32.vlgmr.msra.gmra.mrb[0].mxu1 %vm222_vm0, %v711_v17 }
 0x11b   : > { %v391_v58 = vpop.f32.mrb[0].mxu0  ;;  %v397_v59 = vpop.f32.mrb[0].mxu1 }
 0x11c   : > { %v392_v60 = vadd.f32 %v391_v58, %v215_v56  ;;  %v398_v61 = vadd.f32 %v397_v59, %v215_v56  ;;  %v393_v62 = vpop.f32.mrb[1].mxu0  ;;  %v399_v63 = vpop.f32.mrb[1].mxu1 }
 0x11d   : > { %v394_v0 = vadd.f32 %v393_v62, %v219_v57  ;;  %v400_v1 = vadd.f32 %v399_v63, %v219_v57 }
 0x11e   : > { %402 = vst [vmem:[%s174_s11] sm:$0xff] %v392_v60  ;;  %404 = vst [vmem:[%s174_s11 + $0x10] sm:$0xff] %v398_v61 }
 0x11f   : > { %403 = vst [vmem:[%s174_s11 + $0x8] sm:$0xff] %v394_v0  ;;  %405 = vst [vmem:[%s174_s11 + $0x18] sm:$0xff] %v400_v1 }
 0x120 PF: > { %s13_s12 = sadd.s32 1, %s625_s12  }
 0x121   : > { %p10_p4 = scmp.ge.s32.totalorder %s13_s12, 4  }
 0x123   :  { %12 = sbr.rel (!%p10_p4) target bundleno = 1 (0x1), region = 62 }

</bundles_post_ra>
